<compile_context>
chip_gen: v7x
topology: tpu7x:2x2x1
jax: 0.10.0
libtpu: 0.0.40
codegen_flags: <defaults>
</compile_context>

<pallas_src>
import jax
import jax.numpy as jnp
from jax.experimental import pallas as pl
from jax.experimental.pallas import tpu as pltpu

# Batch tile for the large-B regime (multiple of 8; mem-bound kernels want big
# tiles — measured ~85% of HBM roofline at 512 on v6e — and this still fits
# comfortably in v7x's smaller VMEM for realistic D).
_BLOCK_B = 512


def _ranking_kernel(x_ref, w_ref, o_ref):
    # One lane-level (tb, D) x (D, C) MXU matmul per batch tile, f32 accumulate.
    o_ref[...] = jnp.dot(
        x_ref[...], w_ref[...], preferred_element_type=jnp.float32
    ).astype(o_ref.dtype)


@jax.jit
def ranking_layer_forward(batch_model_out, targ_weight):
    """Pallas implementation of ranking_layer.forward.

    batch_model_out: (B, model_out_dim)
    targ_weight:     (model_out_dim, C), C = targ_size-1 when omit_other=True
    returns:         (B, C) raw prediction scores
    """
    B, D = batch_model_out.shape
    Dw, C = targ_weight.shape
    assert D == Dw, "model_out_dim mismatch"

    out_dtype = jnp.result_type(batch_model_out.dtype, targ_weight.dtype)

    # Tile only the batch axis.  For B <= _BLOCK_B use one full-extent block
    # (full-dim block shapes are always legal, no (8,128) constraint); for
    # larger B use a fixed multiple-of-8 tile and let Pallas mask the edge
    # block's stores (rows past B are read as garbage but never written or
    # reduced over, so this is safe).
    tb = B if B <= _BLOCK_B else _BLOCK_B
    grid = (pl.cdiv(B, tb),)

    cost = pl.CostEstimate(
        flops=2 * B * D * C,
        transcendentals=0,
        bytes_accessed=4 * (B * D + D * C + B * C),
    )

    return pl.pallas_call(
        _ranking_kernel,
        out_shape=jax.ShapeDtypeStruct((B, C), out_dtype),
        grid=grid,
        in_specs=[
            pl.BlockSpec((tb, D), lambda i: (i, 0)),  # batch tile of activations
            pl.BlockSpec((D, C), lambda i: (0, 0)),   # weight resident across grid
        ],
        out_specs=pl.BlockSpec((tb, C), lambda i: (i, 0)),
        compiler_params=pltpu.CompilerParams(
            dimension_semantics=("parallel",)  # shards batch tiles on v7x; no-op on 1-TC parts
        ),
        cost_estimate=cost,
    )(batch_model_out, targ_weight)


if __name__ == "__main__":
    # Small shapes consistent with the module.
    batch_size = 2
    model_out_dim = 32
    targ_size = 5
    omit_other = True
    n_cols = targ_size - 1 if omit_other else targ_size

    key = jax.random.PRNGKey(0)
    k_w, k_x = jax.random.split(key)

    # Parameter init matches the PyTorch module: uniform(-r, r),
    # r = sqrt(6 / (targ_size + model_out_dim)).
    r = float(jnp.sqrt(6.0 / (targ_size + model_out_dim)))
    targ_weight = jax.random.uniform(
        k_w, (model_out_dim, n_cols), jnp.float32, -r, r)

    # batch_model_out: upstream encoder output (B, model_out_dim).
    batch_model_out = jax.random.normal(
        k_x, (batch_size, model_out_dim), jnp.float32)

    scores = ranking_layer_forward(batch_model_out, targ_weight)
    jax.block_until_ready(scores)

    # Correctness check vs. the reference einsum.
    ref = jnp.einsum('bd,dt->bt', batch_model_out, targ_weight)
    assert scores.shape == (batch_size, n_cols)
    assert jnp.allclose(scores, ref, atol=1e-5, rtol=1e-5)

    print("KERNEL_OK")
</pallas_src>

<mosaic_0001>
module attributes {stable_mosaic.version = 11 : i64} {
  func.func @_ranking_kernel(%arg0: i32, %arg1: memref<2x32xf32, #tpu.memory_space<vmem>>, %arg2: memref<32x4xf32, #tpu.memory_space<vmem>>, %arg3: memref<2x4xf32, #tpu.memory_space<vmem>>) attributes {dimension_semantics = [#tpu.dimension_semantics<parallel>], iteration_bounds = array<i64: 1>, scalar_prefetch = 0 : i64, scratch_operands = 0 : i64, tpu.core_type = #tpu.core_type<tc>, window_params = [{transform_indices = @transform_0, window_bounds = array<i64: 2, 32>}, {pipeline_mode = #tpu.pipeline_mode<synchronous>, transform_indices = @transform_1, window_bounds = array<i64: 32, 4>}, {transform_indices = @transform_2, window_bounds = array<i64: 2, 4>}]} {
    %c0 = arith.constant 0 : index
    %c0_0 = arith.constant 0 : index
    %0 = vector.load %arg1[%c0, %c0_0] : memref<2x32xf32, #tpu.memory_space<vmem>>, vector<2x32xf32>
    %c0_1 = arith.constant 0 : index
    %c0_2 = arith.constant 0 : index
    %1 = vector.load %arg2[%c0_1, %c0_2] : memref<32x4xf32, #tpu.memory_space<vmem>>, vector<32x4xf32>
    %cst = arith.constant dense<0.000000e+00> : vector<2x4xf32>
    %2 = tpu.matmul %0, %1, %cst {dimension_numbers = #tpu.dot_dimension_numbers<[1], [0], [0], [1], [0, 0, 1, 1], [], []>} : vector<2x32xf32>, vector<32x4xf32>, vector<2x4xf32> -> vector<2x4xf32>
    %c0_3 = arith.constant 0 : index
    %c0_4 = arith.constant 0 : index
    %3 = vector.load %arg3[%c0_3, %c0_4] : memref<2x4xf32, #tpu.memory_space<vmem>>, vector<2x4xf32>
    tpu.vector_store %arg3[%c0_3, %c0_4], %2 {strides = array<i32>} : memref<2x4xf32, #tpu.memory_space<vmem>>, vector<2x4xf32>,
    return
  }
  func.func @transform_0(%arg0: i32) -> (i32, i32) {
    %c0_i32 = arith.constant 0 : i32
    %c0_i32_0 = arith.constant 0 : i32
    return %arg0, %c0_i32 : i32, i32
  }
  func.func @transform_1(%arg0: i32) -> (i32, i32) {
    %c0_i32 = arith.constant 0 : i32
    %c0_i32_0 = arith.constant 0 : i32
    %c0_i32_1 = arith.constant 0 : i32
    return %c0_i32, %c0_i32_0 : i32, i32
  }
  func.func @transform_2(%arg0: i32) -> (i32, i32) {
    %c0_i32 = arith.constant 0 : i32
    %c0_i32_0 = arith.constant 0 : i32
    return %arg0, %c0_i32 : i32, i32
  }
}

</mosaic_0001>

<bundles_post_ra>
// kernel: ranking_layer_forward.1
= control target key start
LH: loop header
LB: loop body
LE: loop exit
PB: predicated region body
PF: predicated region fallthrough
CT: control target
= control target key end

     0   :  { %v158_v3 = vmov 0.0|0.0   ;;  %vm159_vm0 = vmmov 0   ;;  %v160_v6 = vmov 0.0   ;;  %s204_s0 = inlined_call_operand.vmem [shape: f32[2,32], index: 0, kind: input, shape index: {}]   ;;  %s205_s1 = inlined_call_operand.vmem [shape: f32[32,4], index: 1, kind: input, shape index: {}]   ;;  %s206_s2 = inlined_call_operand.hbm [shape: f32[2,4], index: 2, kind: output, shape index: {}]  }
   0x1   :  { %v13_v0 = vld [vmem:[%s205_s1] sm:$0xff]  ;;  %v14_v1 = vld [vmem:[%s205_s1 + $0x8] sm:$0xff]  ;;  %v15_v2 = vld [vmem:[%s205_s1 + $0x10] sm:$0xff]  ;;  %124 = vmatprep.subr.bf16.mxu0 %v158_v3  ;;  %121 = vmatprep.mubr.msk.f32.mxu0 %vm159_vm0, %v160_v6 }
   0x2   :  { %v125_v4 = vpack.c.bf16 %v14_v1, %v13_v0  ;;  %v16_v5 = vld [vmem:[%s205_s1 + $0x18] sm:$0xff] }
   0x3   :  { %7 = vsyncpa [#allocation3], 0  ;;  %v128_v7 = vpack.c.bf16 %v16_v5, %v15_v2  ;;  %v12_v8 = vld [vmem:[%s204_s0] sm:$0x3]  ;;  %vm17_vm1 = vcmask 261120   ;;  %s161_s19 = smov [#allocation2]  }
   0x4   :  { %126 = vmatpush3.bf16.msra.mxu0 %v125_v4  ;;  %s99_s20 = sshll.u32 %s161_s19, 4  ;;  %vm91_vm2 = vcmask 25600   ;;  %s100_s20 = int_to_ptr.vmem [resolvable:$true] %s99_s20 }
   0x5   :  { %127 = vmatprep.subr.bf16.mxu0 %v158_v3  ;;  %s134_s1 = scalar_lea.vmem %s100_s20, 32  ;;  %p139_p1 = scmp.lt.s32.totalorder %s100_s20, %s100_s20 }
   0x6   :  { %p135_p0 = scmp.ne.s32.totalorder %s100_s20, %s134_s1  ;;  %p140_p2 = scmp.lt.s32.totalorder %s134_s1, %s134_s1 }
   0x8   :  { %129 = vmatpush3.bf16.msra.mxu0 %v128_v7  ;;  %p141_p3 = por %p140_p2, %p139_p1 }
   0xa   :  { %p142_p4 = pnand %p141_p3, %p135_p0 }
   0xb   :  { %122 = vmatmul.mubr.msk.f32.vlgmr.msra.gmra.mrb[0].mxu0 %vm17_vm1, %v12_v8 }
  0xde   :  { %v87_v9 = vpop.f32.mrb[0].mxu0 }
  0xdf   :  { %92 = vst.msk [vmem:[#allocation2] sm:$0x3] %vm91_vm2, %v87_v9  ;;  %v123_v10 = vpop.f32.mrb[1].mxu0 }
  0xe0   :  { %145 = shalt.err (!%p142_p4)
}
  0xe1   :  { %s146_s0 = scalar_lea.hbm %s206_s2, 32 }
  0xe2   :  { %p147_p5 = scmp.ne.s32.totalorder %s206_s2, %s146_s0  ;;  %p150_p6 = scmp.lt.u32.totalorder %s146_s0, %s206_s2 }
  0xe4   :  { %p152_p7 = pnand %p150_p6, %p147_p5 }
  0xe6   :  { %155 = shalt.err (!%p152_p7)
}
  0xe7   :  { %102 = dma.vmem_to_hbm [thread:$0]  %s100_s20, 32, %s206_s2, [#allocation3]  }
  0xe8   :  { %156 = dma.done.wait [#allocation3], 32  }
  0xe9   :  { %157 = vsyncadd [#allocation3], 4294967264 }
  0xea   :  { %106 = vsyncpa [#allocation3], 1 }

</bundles_post_ra>
